<compile_context>
chip_gen: v6e
topology: v6e:2x2x1
jax: 0.10.0
libtpu: 0.0.40
codegen_flags: <defaults>
</compile_context>

<pallas_src>
import functools

import jax
import jax.numpy as jnp
import numpy as np
from jax.experimental import pallas as pl
from jax.experimental.pallas import tpu as pltpu


# ------------------------------------------------------------------ kernel

def _linear_kernel(x_ref, w_ref, b_ref, o_ref):
    # x_ref: (TM, K)   w_ref: (K, C_pad)   b_ref: (1, C_pad)   o_ref: (TM, C_pad)
    y = jnp.dot(x_ref[...], w_ref[...], preferred_element_type=jnp.float32)
    o_ref[...] = y + b_ref[...]          # full-width (lane-dense) store


# ------------------------------------------------------------------ wrapper

def _round_up(x, m):
    return ((x + m - 1) // m) * m


@functools.partial(jax.jit, static_argnames=("block_m", "use_bf16"))
def cls_encoder_s(x, w, b, *, block_m=128, use_bf16=False):
    """x: (B, 512) f32.  w: (num_fonts, 512) (PyTorch Linear layout).  b: (num_fonts,).
    Returns (B, num_fonts) == x @ w.T + b (matching CLSEncoderS.forward)."""
    B, K = x.shape
    C = w.shape[0]

    # Lane-dense output: pad the output-feature dim to a multiple of 128.
    C_pad = _round_up(C, 128)
    # Sublane-align the row dim and pick the row tile.
    B_pad = _round_up(B, 8)
    TM = min(block_m, B_pad)
    B_pad = _round_up(B_pad, TM)

    dot_dtype = jnp.bfloat16 if use_bf16 else jnp.float32

    x_p = jnp.pad(x.astype(jnp.float32), ((0, B_pad - B), (0, 0))).astype(dot_dtype)
    w_mat = jnp.pad(jnp.transpose(w).astype(jnp.float32),
                    ((0, 0), (0, C_pad - C))).astype(dot_dtype)       # (K, C_pad)
    b_row = jnp.pad(b.astype(jnp.float32), (0, C_pad - C)).reshape(1, C_pad)

    grid = (B_pad // TM,)

    out = pl.pallas_call(
        _linear_kernel,
        out_shape=jax.ShapeDtypeStruct((B_pad, C_pad), jnp.float32),
        grid_spec=pltpu.PrefetchScalarGridSpec(
            num_scalar_prefetch=0,
            grid=grid,
            in_specs=[
                pl.BlockSpec((TM, K), lambda i: (i, 0)),      # row tile of x
                pl.BlockSpec((K, C_pad), lambda i: (0, 0)),   # full weight (invariant)
                pl.BlockSpec((1, C_pad), lambda i: (0, 0)),   # bias row (invariant)
            ],
            out_specs=pl.BlockSpec((TM, C_pad), lambda i: (i, 0)),
        ),
        compiler_params=pltpu.CompilerParams(
            dimension_semantics=("parallel",)),
    )(x_p, w_mat, b_row)                                       # (B_pad, C_pad)

    return out[:B, :C]


# ------------------------------------------------------------------ main

if __name__ == "__main__":
    # Shapes implied by the module: hidden=512 (fixed by nn.Linear(512, ...)),
    # num_fonts=21, small batch=2.
    B, D, num_fonts = 2, 512, 21

    key = jax.random.PRNGKey(0)
    kx, kw, kb = jax.random.split(key, 3)
    x = jax.random.normal(kx, (B, D), jnp.float32)
    w = jax.random.normal(kw, (num_fonts, D), jnp.float32) * 0.05
    b = jax.random.normal(kb, (num_fonts,), jnp.float32) * 0.05

    out = cls_encoder_s(x, w, b)
    out = jax.block_until_ready(out)

    # f32 reference at highest precision (the kernel accumulates in f32).
    ref = jnp.dot(x, w.T, precision=jax.lax.Precision.HIGHEST) + b
    np.testing.assert_allclose(np.asarray(out), np.asarray(ref),
                               rtol=2e-4, atol=2e-4)
    assert out.shape == (B, num_fonts)

    print("KERNEL_OK")
</pallas_src>

<mosaic_0001>
module attributes {stable_mosaic.version = 11 : i64} {
  func.func @_linear_kernel(%arg0: i32, %arg1: memref<8x512xf32, #tpu.memory_space<vmem>>, %arg2: memref<512x128xf32, #tpu.memory_space<vmem>>, %arg3: memref<1x128xf32, #tpu.memory_space<vmem>>, %arg4: memref<8x128xf32, #tpu.memory_space<vmem>>) attributes {dimension_semantics = [#tpu.dimension_semantics<parallel>], iteration_bounds = array<i64: 1>, scalar_prefetch = 0 : i64, scratch_operands = 0 : i64, tpu.core_type = #tpu.core_type<tc>, window_params = [{transform_indices = @transform_0, window_bounds = array<i64: 8, 512>}, {pipeline_mode = #tpu.pipeline_mode<synchronous>, transform_indices = @transform_1, window_bounds = array<i64: 512, 128>}, {pipeline_mode = #tpu.pipeline_mode<synchronous>, transform_indices = @transform_2, window_bounds = array<i64: 1, 128>}, {transform_indices = @transform_3, window_bounds = array<i64: 8, 128>}]} {
    %c0 = arith.constant 0 : index
    %c0_0 = arith.constant 0 : index
    %0 = vector.load %arg1[%c0, %c0_0] : memref<8x512xf32, #tpu.memory_space<vmem>>, vector<8x512xf32>
    %c0_1 = arith.constant 0 : index
    %c0_2 = arith.constant 0 : index
    %1 = vector.load %arg2[%c0_1, %c0_2] : memref<512x128xf32, #tpu.memory_space<vmem>>, vector<512x128xf32>
    %cst = arith.constant dense<0.000000e+00> : vector<8x128xf32>
    %2 = tpu.matmul %0, %1, %cst {dimension_numbers = #tpu.dot_dimension_numbers<[1], [0], [0], [1], [0, 0, 1, 1], [], []>} : vector<8x512xf32>, vector<512x128xf32>, vector<8x128xf32> -> vector<8x128xf32>
    %c0_3 = arith.constant 0 : index
    %c0_4 = arith.constant 0 : index
    %3 = vector.load %arg3[%c0_3, %c0_4] : memref<1x128xf32, #tpu.memory_space<vmem>>, vector<1x128xf32>
    %4 = vector.broadcast %3 : vector<1x128xf32> to vector<8x128xf32>
    %5 = arith.addf %2, %4 : vector<8x128xf32>
    %c0_5 = arith.constant 0 : index
    %c0_6 = arith.constant 0 : index
    %6 = vector.load %arg4[%c0_5, %c0_6] : memref<8x128xf32, #tpu.memory_space<vmem>>, vector<8x128xf32>
    tpu.vector_store %arg4[%c0_5, %c0_6], %5 {strides = array<i32>} : memref<8x128xf32, #tpu.memory_space<vmem>>, vector<8x128xf32>,
    return
  }
  func.func @transform_0(%arg0: i32) -> (i32, i32) {
    %c0_i32 = arith.constant 0 : i32
    %c0_i32_0 = arith.constant 0 : i32
    return %arg0, %c0_i32 : i32, i32
  }
  func.func @transform_1(%arg0: i32) -> (i32, i32) {
    %c0_i32 = arith.constant 0 : i32
    %c0_i32_0 = arith.constant 0 : i32
    %c0_i32_1 = arith.constant 0 : i32
    return %c0_i32, %c0_i32_0 : i32, i32
  }
  func.func @transform_2(%arg0: i32) -> (i32, i32) {
    %c0_i32 = arith.constant 0 : i32
    %c0_i32_0 = arith.constant 0 : i32
    %c0_i32_1 = arith.constant 0 : i32
    return %c0_i32, %c0_i32_0 : i32, i32
  }
  func.func @transform_3(%arg0: i32) -> (i32, i32) {
    %c0_i32 = arith.constant 0 : i32
    %c0_i32_0 = arith.constant 0 : i32
    return %arg0, %c0_i32 : i32, i32
  }
}

</mosaic_0001>

<bundles_post_ra>
// kernel: cls_encoder_s.1
= control target key start
LH: loop header
LB: loop body
LE: loop exit
PB: predicated region body
PF: predicated region fallthrough
CT: control target
= control target key end

     0   :  { %s535_s1 = inlined_call_operand.vmem [shape: f32[512,128], index: 1, kind: input, shape index: {}]   ;;  %s536_s0 = inlined_call_operand.vmem [shape: f32[8,512], index: 0, kind: input, shape index: {}]   ;;  %s537_s2 = inlined_call_operand.vmem [shape: f32[1,128], index: 2, kind: input, shape index: {}]   ;;  %s538_s3 = inlined_call_operand.vmem [shape: f32[8,128], index: 3, kind: output, shape index: {}]  }
   0x1   :  { %v49_v0 = vld [vmem:[%s535_s1 + $0xf8] sm:$0xff]  ;;  %v48_v4 = vld [vmem:[%s535_s1 + $0xf0] sm:$0xff]  ;;  %v47_v8 = vld [vmem:[%s535_s1 + $0xe8] sm:$0xff] }
   0x2   :  { %v81_v1 = vld [vmem:[%s535_s1 + $0x1f8] sm:$0xff]  ;;  %235 = vmatprep.subr.mxu0 %v49_v0  ;;  %v80_v5 = vld [vmem:[%s535_s1 + $0x1f0] sm:$0xff]  ;;  %v79_v9 = vld [vmem:[%s535_s1 + $0x1e8] sm:$0xff] }
   0x3   :  { %v33_v2 = vld [vmem:[%s535_s1 + $0x78] sm:$0xff]  ;;  %270 = vmatprep.subr.mxu1 %v81_v1  ;;  %v32_v6 = vld [vmem:[%s535_s1 + $0x70] sm:$0xff]  ;;  %v31_v10 = vld [vmem:[%s535_s1 + $0x68] sm:$0xff] }
   0x4   :  { %v65_v3 = vld [vmem:[%s535_s1 + $0x178] sm:$0xff]  ;;  %236 = vmatpush3.msra.mxu0 %v33_v2  ;;  %v64_v7 = vld [vmem:[%s535_s1 + $0x170] sm:$0xff]  ;;  %v63_v11 = vld [vmem:[%s535_s1 + $0x168] sm:$0xff] }
   0x5   :  { %271 = vmatpush3.msra.mxu1 %v65_v3  ;;  %237 = vmatprep.subr.mxu0 %v48_v4  ;;  %v46_v12 = vld [vmem:[%s535_s1 + $0xe0] sm:$0xff]  ;;  %v45_v16 = vld [vmem:[%s535_s1 + $0xd8] sm:$0xff]  ;;  %v44_v20 = vld [vmem:[%s535_s1 + $0xd0] sm:$0xff] }
   0x6   :  { %272 = vmatprep.subr.mxu1 %v80_v5  ;;  %238 = vmatpush3.msra.mxu0 %v32_v6  ;;  %v78_v13 = vld [vmem:[%s535_s1 + $0x1e0] sm:$0xff]  ;;  %v77_v17 = vld [vmem:[%s535_s1 + $0x1d8] sm:$0xff]  ;;  %v76_v21 = vld [vmem:[%s535_s1 + $0x1d0] sm:$0xff] }
   0x7   :  { %273 = vmatpush3.msra.mxu1 %v64_v7  ;;  %239 = vmatprep.subr.mxu0 %v47_v8  ;;  %v30_v14 = vld [vmem:[%s535_s1 + $0x60] sm:$0xff]  ;;  %v29_v18 = vld [vmem:[%s535_s1 + $0x58] sm:$0xff]  ;;  %v28_v22 = vld [vmem:[%s535_s1 + $0x50] sm:$0xff] }
   0x8   :  { %274 = vmatprep.subr.mxu1 %v79_v9  ;;  %v62_v15 = vld [vmem:[%s535_s1 + $0x160] sm:$0xff]  ;;  %240 = vmatpush3.msra.mxu0 %v31_v10  ;;  %v61_v19 = vld [vmem:[%s535_s1 + $0x158] sm:$0xff]  ;;  %v60_v23 = vld [vmem:[%s535_s1 + $0x150] sm:$0xff] }
   0x9   :  { %275 = vmatpush3.msra.mxu1 %v63_v11  ;;  %241 = vmatprep.subr.mxu0 %v46_v12  ;;  %v43_v24 = vld [vmem:[%s535_s1 + $0xc8] sm:$0xff]  ;;  %v42_v28 = vld [vmem:[%s535_s1 + $0xc0] sm:$0xff]  ;;  %v41_v32 = vld [vmem:[%s535_s1 + $0xb8] sm:$0xff] }
   0xa   :  { %276 = vmatprep.subr.mxu1 %v78_v13  ;;  %242 = vmatpush3.msra.mxu0 %v30_v14  ;;  %v75_v25 = vld [vmem:[%s535_s1 + $0x1c8] sm:$0xff]  ;;  %v74_v29 = vld [vmem:[%s535_s1 + $0x1c0] sm:$0xff]  ;;  %v73_v33 = vld [vmem:[%s535_s1 + $0x1b8] sm:$0xff] }
   0xb   :  { %277 = vmatpush3.msra.mxu1 %v62_v15  ;;  %243 = vmatprep.subr.mxu0 %v45_v16  ;;  %v27_v26 = vld [vmem:[%s535_s1 + $0x48] sm:$0xff]  ;;  %v26_v30 = vld [vmem:[%s535_s1 + $0x40] sm:$0xff]  ;;  %v25_v34 = vld [vmem:[%s535_s1 + $0x38] sm:$0xff] }
   0xc   :  { %278 = vmatprep.subr.mxu1 %v77_v17  ;;  %244 = vmatpush3.msra.mxu0 %v29_v18  ;;  %v59_v27 = vld [vmem:[%s535_s1 + $0x148] sm:$0xff]  ;;  %v58_v31 = vld [vmem:[%s535_s1 + $0x140] sm:$0xff]  ;;  %v57_v35 = vld [vmem:[%s535_s1 + $0x138] sm:$0xff] }
   0xd   :  { %279 = vmatpush3.msra.mxu1 %v61_v19  ;;  %245 = vmatprep.subr.mxu0 %v44_v20  ;;  %v40_v36 = vld [vmem:[%s535_s1 + $0xb0] sm:$0xff]  ;;  %v39_v40 = vld [vmem:[%s535_s1 + $0xa8] sm:$0xff]  ;;  %v38_v44 = vld [vmem:[%s535_s1 + $0xa0] sm:$0xff] }
   0xe   :  { %280 = vmatprep.subr.mxu1 %v76_v21  ;;  %246 = vmatpush3.msra.mxu0 %v28_v22  ;;  %v72_v37 = vld [vmem:[%s535_s1 + $0x1b0] sm:$0xff]  ;;  %v71_v41 = vld [vmem:[%s535_s1 + $0x1a8] sm:$0xff]  ;;  %v70_v45 = vld [vmem:[%s535_s1 + $0x1a0] sm:$0xff] }
   0xf   :  { %281 = vmatpush3.msra.mxu1 %v60_v23  ;;  %247 = vmatprep.subr.mxu0 %v43_v24  ;;  %v24_v38 = vld [vmem:[%s535_s1 + $0x30] sm:$0xff]  ;;  %v23_v42 = vld [vmem:[%s535_s1 + $0x28] sm:$0xff]  ;;  %v22_v46 = vld [vmem:[%s535_s1 + $0x20] sm:$0xff] }
  0x10   :  { %282 = vmatprep.subr.mxu1 %v75_v25  ;;  %248 = vmatpush3.msra.mxu0 %v27_v26  ;;  %v56_v39 = vld [vmem:[%s535_s1 + $0x130] sm:$0xff]  ;;  %v55_v43 = vld [vmem:[%s535_s1 + $0x128] sm:$0xff]  ;;  %v54_v47 = vld [vmem:[%s535_s1 + $0x120] sm:$0xff] }
  0x11   :  { %283 = vmatpush3.msra.mxu1 %v59_v27  ;;  %249 = vmatprep.subr.mxu0 %v42_v28  ;;  %v37_v48 = vld [vmem:[%s535_s1 + $0x98] sm:$0xff]  ;;  %v36_v52 = vld [vmem:[%s535_s1 + $0x90] sm:$0xff]  ;;  %v35_v56 = vld [vmem:[%s535_s1 + $0x88] sm:$0xff] }
  0x12   :  { %284 = vmatprep.subr.mxu1 %v74_v29  ;;  %250 = vmatpush3.msra.mxu0 %v26_v30  ;;  %v69_v49 = vld [vmem:[%s535_s1 + $0x198] sm:$0xff]  ;;  %v68_v53 = vld [vmem:[%s535_s1 + $0x190] sm:$0xff]  ;;  %v67_v57 = vld [vmem:[%s535_s1 + $0x188] sm:$0xff] }
  0x13   :  { %285 = vmatpush3.msra.mxu1 %v58_v31  ;;  %251 = vmatprep.subr.mxu0 %v41_v32  ;;  %v21_v50 = vld [vmem:[%s535_s1 + $0x18] sm:$0xff]  ;;  %v20_v54 = vld [vmem:[%s535_s1 + $0x10] sm:$0xff]  ;;  %v19_v58 = vld [vmem:[%s535_s1 + $0x8] sm:$0xff] }
  0x14   :  { %286 = vmatprep.subr.mxu1 %v73_v33  ;;  %252 = vmatpush3.msra.mxu0 %v25_v34  ;;  %v53_v51 = vld [vmem:[%s535_s1 + $0x118] sm:$0xff]  ;;  %v52_v55 = vld [vmem:[%s535_s1 + $0x110] sm:$0xff]  ;;  %v51_v59 = vld [vmem:[%s535_s1 + $0x108] sm:$0xff] }
  0x15   :  { %287 = vmatpush3.msra.mxu1 %v57_v35  ;;  %253 = vmatprep.subr.mxu0 %v40_v36  ;;  %v34_v60 = vld [vmem:[%s535_s1 + $0x80] sm:$0xff]  ;;  %v15_v63 = vld [vmem:[%s536_s0 + $0x8] sm:$0xff]  ;;  %v17_v1 = vld [vmem:[%s536_s0 + $0x18] sm:$0xff] }
  0x16   :  { %288 = vmatprep.subr.mxu1 %v72_v37  ;;  %254 = vmatpush3.msra.mxu0 %v24_v38  ;;  %v66_v61 = vld [vmem:[%s535_s1 + $0x180] sm:$0xff]  ;;  %v16_v3 = vld [vmem:[%s536_s0 + $0x10] sm:$0xff] }
  0x17   :  { %289 = vmatpush3.msra.mxu1 %v56_v39  ;;  %255 = vmatprep.subr.mxu0 %v39_v40  ;;  %v18_v62 = vld [vmem:[%s535_s1] sm:$0xff] }
  0x18   :  { %290 = vmatprep.subr.mxu1 %v71_v41  ;;  %256 = vmatpush3.msra.mxu0 %v23_v42  ;;  %v50_v0 = vld [vmem:[%s535_s1 + $0x100] sm:$0xff] }
  0x19   :  { %291 = vmatpush3.msra.mxu1 %v55_v43  ;;  %257 = vmatprep.subr.mxu0 %v38_v44  ;;  %v14_v2 = vld [vmem:[%s536_s0] sm:$0xff] }
  0x1a   :  { %292 = vmatprep.subr.mxu1 %v70_v45  ;;  %258 = vmatpush3.msra.mxu0 %v22_v46  ;;  %v234_v6 = vld [vmem:[%s537_s2] ss:$0 sm:$0xff] }
  0x1b   :  { %293 = vmatpush3.msra.mxu1 %v54_v47  ;;  %259 = vmatprep.subr.mxu0 %v37_v48 }
  0x1c   :  { %294 = vmatprep.subr.mxu1 %v69_v49  ;;  %260 = vmatpush3.msra.mxu0 %v21_v50 }
  0x1d   :  { %295 = vmatpush3.msra.mxu1 %v53_v51  ;;  %261 = vmatprep.subr.mxu0 %v36_v52 }
  0x1e   :  { %296 = vmatprep.subr.mxu1 %v68_v53  ;;  %262 = vmatpush3.msra.mxu0 %v20_v54 }
  0x1f   :  { %297 = vmatpush3.msra.mxu1 %v52_v55  ;;  %263 = vmatprep.subr.mxu0 %v35_v56 }
  0x20   :  { %298 = vmatprep.subr.mxu1 %v67_v57  ;;  %264 = vmatpush3.msra.mxu0 %v19_v58 }
  0x21   :  { %299 = vmatpush3.msra.mxu1 %v51_v59  ;;  %265 = vmatprep.subr.mxu0 %v34_v60 }
  0x22   :  { %300 = vmatprep.subr.mxu1 %v66_v61  ;;  %266 = vmatpush3.msra.mxu0 %v18_v62 }
  0x23   :  { %153 = vmatprep.mubr.f32.mxu0 %v15_v63  ;;  %301 = vmatpush3.msra.mxu1 %v50_v0 }
  0x24   :  { %223 = vmatprep.mubr.f32.mxu1 %v17_v1  ;;  %154 = vmatmul.mubr.f32.vlgmr.msra.gmra.mxu0 %v14_v2 }
  0x25   :  { %224 = vmatmul.mubr.f32.vlgmr.msra.gmra.mxu1 %v16_v3 }
  0xe4   :  { %v267_v4 = vpop.f32.mrf.mxu0 }
  0xe5   :  { %v302_v5 = vpop.f32.mrf.mxu1 }
  0xe6   :  { %v268_v7 = vpop.f32.mrf.mxu0 }
  0xe7   :  { %v303_v8 = vpop.f32.mrf.mxu1  ;;  %v269_v9 = vadd.f32 %v268_v7, %v267_v4 }
  0xe8   :  { %v304_v11 = vadd.f32 %v303_v8, %v302_v5 }
  0xe9   :  { %v156_v10 = vadd.f32 %v269_v9, %v234_v6 }
  0xeb   :  { %v226_v12 = vadd.f32 %v304_v11, %v156_v10 }
  0xed   :  { %229 = vst [vmem:[%s538_s3] sm:$0xff] %v226_v12 }

</bundles_post_ra>
